<compile_context>
chip_gen: v7x
topology: tpu7x:2x2x1
jax: 0.10.0
libtpu: 0.0.40
codegen_flags: <defaults>
</compile_context>

<pallas_src>
import functools

import jax
import jax.numpy as jnp
from jax.experimental import pallas as pl
from jax.experimental.pallas import tpu as pltpu


def linear_bud_kernel(x_ref, w1_ref, b1_ref, w2_ref, b2_ref, w3_ref, b3_ref, o_ref):
    """Fused forward for one batch tile, in grouped (lane-dense) layout.

    x_ref:  (TR, G*size_in)   f32  -- G batch rows packed per kernel row
    wN_ref: block-diagonal kron(I_G, W_N), bf16, pre-transposed to (in, out)
            (scale already folded into W1)
    bN_ref: (1, G*out_N)      f32
    o_ref:  (TR, G*size_out)  f32  -- G*size_out == 128: unmasked 128-lane stores
    """
    # Layer 1: Linear(size_in -> layers[0]) + ReLU   (scale folded into W1)
    h = jnp.dot(x_ref[...].astype(jnp.bfloat16), w1_ref[...],
                preferred_element_type=jnp.float32) + b1_ref[...]
    h = jnp.maximum(h, 0.0)

    # Layer 2: Linear(layers[0] -> layers[1]) + ReLU
    h = jnp.dot(h.astype(jnp.bfloat16), w2_ref[...],
                preferred_element_type=jnp.float32) + b2_ref[...]
    h = jnp.maximum(h, 0.0)

    # Layer 3: Linear(layers[1] -> size_out) + Sigmoid (activation_out)
    h = jnp.dot(h.astype(jnp.bfloat16), w3_ref[...],
                preferred_element_type=jnp.float32) + b3_ref[...]
    o_ref[...] = jax.nn.sigmoid(h).astype(o_ref.dtype)


def prepare_params(scale, w1, b1, w2, b2, w3, b3, *, group):
    """One-time parameter prep (outside the hot path).

    * folds the fixed scale into W1:  x*scale @ W1 == x @ (diag(scale) @ W1)
    * expands each weight to block-diagonal kron(I_group, W) so `group` batch rows
      can be processed per lane-dense kernel row
    * casts matmul operands to bf16; biases stay f32.
    """
    eye = jnp.eye(group, dtype=jnp.float32)
    w1s = scale.reshape(-1, 1) * w1                      # fold scale into W1
    w1g = jnp.kron(eye, w1s).astype(jnp.bfloat16)        # (G*in,  G*h1)
    w2g = jnp.kron(eye, w2).astype(jnp.bfloat16)         # (G*h1,  G*h2)
    w3g = jnp.kron(eye, w3).astype(jnp.bfloat16)         # (G*h2,  G*out)
    b1g = jnp.tile(b1, (1, group))                       # (1, G*h1) f32
    b2g = jnp.tile(b2, (1, group))
    b3g = jnp.tile(b3, (1, group))
    return w1g, b1g, w2g, b2g, w3g, b3g


@functools.partial(jax.jit, static_argnames=("group", "tile_b"))
def linear_bud_forward(x, w1g, b1g, w2g, b2g, w3g, b3g, *, group=8, tile_b=1024):
    B, size_in = x.shape
    size_out = w3g.shape[1] // group
    G = group

    def round_up(v, m):
        return ((v + m - 1) // m) * m

    # --- batch tile selection -------------------------------------------------
    # Large tiles amortize the ~0.35 us per-grid-step overhead; keep >=2 grid
    # steps whenever the batch allows so v7x can shard the parallel axis across
    # its 2 TensorCores.  tile_b must be a multiple of 8*G so grouped block rows
    # stay sublane-aligned.
    align = 8 * G
    req = max(align, (tile_b // align) * align)
    if B >= 2 * req:
        tb = req
    else:
        tb = max(align, round_up(B, 2 * align) // 2)

    # Ragged batches: zero-pad, slice the result at the end.
    B_pad = round_up(B, tb)
    if B_pad != B:
        x = jnp.pad(x, ((0, B_pad - B), (0, 0)))

    # --- grouped (lane-dense) view: pure row-major reshapes, free in XLA -------
    R, TR = B_pad // G, tb // G
    xg = x.reshape(R, G * size_in)

    def rep(shape):  # parameter blocks: constant index -> fetched once, held resident
        return pl.BlockSpec(shape, lambda i, _n=len(shape): (0,) * _n)

    out = pl.pallas_call(
        linear_bud_kernel,
        out_shape=jax.ShapeDtypeStruct((R, G * size_out), x.dtype),
        grid_spec=pltpu.PrefetchScalarGridSpec(
            num_scalar_prefetch=0,
            grid=(R // TR,),
            in_specs=[
                pl.BlockSpec((TR, G * size_in), lambda i: (i, 0)),   # x (tiled on batch)
                rep(w1g.shape), rep(b1g.shape),
                rep(w2g.shape), rep(b2g.shape),
                rep(w3g.shape), rep(b3g.shape),
            ],
            out_specs=pl.BlockSpec((TR, G * size_out), lambda i: (i, 0)),
        ),
        compiler_params=pltpu.CompilerParams(
            dimension_semantics=("parallel",),
            # v5e's scoped-VMEM default is 16 MiB; raise so large tiles work there too
            # (32 MiB is also within v7x's 64 MiB physical VMEM).
            vmem_limit_bytes=32 * 1024 * 1024,
        ),
    )(xg, w1g, b1g, w2g, b2g, w3g, b3g)

    out = out.reshape(B_pad, size_out)
    return out[:B] if B_pad != B else out


def init_linear(key, fan_in, fan_out):
    """Deterministic PyTorch-style Linear init: U(-1/sqrt(fan_in), 1/sqrt(fan_in)).

    Returned weight is already transposed to (fan_in, fan_out)."""
    kw, kb = jax.random.split(key)
    bound = 1.0 / (fan_in ** 0.5)
    w = jax.random.uniform(kw, (fan_in, fan_out), jnp.float32, -bound, bound)
    b = jax.random.uniform(kb, (1, fan_out), jnp.float32, -bound, bound)
    return w, b


def reference_forward(x, scale, w1, b1, w2, b2, w3, b3):
    """Plain-JAX f32 reference mirroring the PyTorch forward."""
    h = x * scale
    h = jnp.maximum(h @ w1 + b1, 0.0)
    h = jnp.maximum(h @ w2 + b2, 0.0)
    return jax.nn.sigmoid(h @ w3 + b3)


if __name__ == "__main__":
    batch = 256          # small, but enough for 2 grid steps (exercises v7x sharding path)
    size_in = 32
    layers = [64, 32]
    size_out = 16

    # GROUP batch rows packed per lane-dense kernel row: GROUP*size_out == 128.
    assert 128 % size_out == 0
    GROUP = 128 // size_out

    key = jax.random.PRNGKey(0)
    kx, k1, k2, k3 = jax.random.split(key, 4)

    x = jax.random.normal(kx, (batch, size_in), jnp.float32)

    # self.weight = ones(1, size_in) / size_in  (fixed scale, not trainable)
    scale = jnp.full((1, size_in), 1.0 / size_in, jnp.float32)

    w1, b1 = init_linear(k1, size_in, layers[0])
    w2, b2 = init_linear(k2, layers[0], layers[1])
    w3, b3 = init_linear(k3, layers[1], size_out)

    params = prepare_params(scale, w1, b1, w2, b2, w3, b3, group=GROUP)
    out = linear_bud_forward(x, *params, group=GROUP, tile_b=1024)
    out = jax.block_until_ready(out)

    ref = reference_forward(x, scale, w1, b1, w2, b2, w3, b3)
    assert out.shape == (batch, size_out)
    max_err = float(jnp.max(jnp.abs(out - ref)))
    # bf16 MXU operands loosen the old 1e-5 tolerance slightly (f32 accumulation kept).
    assert max_err < 1e-2, f"mismatch vs reference: max abs err {max_err}"

    print("KERNEL_OK")
</pallas_src>

<mosaic_0001>
module attributes {stable_mosaic.version = 11 : i64} {
  func.func @linear_bud_kernel(%arg0: i32, %arg1: memref<16x256xf32, #tpu.memory_space<vmem>>, %arg2: memref<256x512xbf16, #tpu.memory_space<vmem>>, %arg3: memref<1x512xf32, #tpu.memory_space<vmem>>, %arg4: memref<512x256xbf16, #tpu.memory_space<vmem>>, %arg5: memref<1x256xf32, #tpu.memory_space<vmem>>, %arg6: memref<256x128xbf16, #tpu.memory_space<vmem>>, %arg7: memref<1x128xf32, #tpu.memory_space<vmem>>, %arg8: memref<16x128xf32, #tpu.memory_space<vmem>>) attributes {dimension_semantics = [#tpu.dimension_semantics<parallel>], iteration_bounds = array<i64: 2>, scalar_prefetch = 0 : i64, scratch_operands = 0 : i64, tpu.core_type = #tpu.core_type<tc>, window_params = [{transform_indices = @transform_0, window_bounds = array<i64: 16, 256>}, {pipeline_mode = #tpu.pipeline_mode<synchronous>, transform_indices = @transform_1, window_bounds = array<i64: 256, 512>}, {pipeline_mode = #tpu.pipeline_mode<synchronous>, transform_indices = @transform_2, window_bounds = array<i64: 1, 512>}, {pipeline_mode = #tpu.pipeline_mode<synchronous>, transform_indices = @transform_3, window_bounds = array<i64: 512, 256>}, {pipeline_mode = #tpu.pipeline_mode<synchronous>, transform_indices = @transform_4, window_bounds = array<i64: 1, 256>}, {pipeline_mode = #tpu.pipeline_mode<synchronous>, transform_indices = @transform_5, window_bounds = array<i64: 256, 128>}, {pipeline_mode = #tpu.pipeline_mode<synchronous>, transform_indices = @transform_6, window_bounds = array<i64: 1, 128>}, {transform_indices = @transform_7, window_bounds = array<i64: 16, 128>}]} {
    %c0 = arith.constant 0 : index
    %c0_0 = arith.constant 0 : index
    %0 = vector.load %arg1[%c0, %c0_0] : memref<16x256xf32, #tpu.memory_space<vmem>>, vector<16x256xf32>
    %1 = arith.truncf %0 : vector<16x256xf32> to vector<16x256xbf16>
    %c0_1 = arith.constant 0 : index
    %c0_2 = arith.constant 0 : index
    %2 = vector.load %arg2[%c0_1, %c0_2] : memref<256x512xbf16, #tpu.memory_space<vmem>>, vector<256x512xbf16>
    %cst = arith.constant dense<0.000000e+00> : vector<16x512xf32>
    %3 = tpu.matmul %1, %2, %cst {dimension_numbers = #tpu.dot_dimension_numbers<[1], [0], [0], [1], [0, 0, 1, 1], [], []>} : vector<16x256xbf16>, vector<256x512xbf16>, vector<16x512xf32> -> vector<16x512xf32>
    %c0_3 = arith.constant 0 : index
    %c0_4 = arith.constant 0 : index
    %4 = vector.load %arg3[%c0_3, %c0_4] : memref<1x512xf32, #tpu.memory_space<vmem>>, vector<1x512xf32>
    %5 = vector.broadcast %4 : vector<1x512xf32> to vector<16x512xf32>
    %6 = arith.addf %3, %5 : vector<16x512xf32>
    %cst_5 = arith.constant 0.000000e+00 : f32
    %7 = vector.broadcast %cst_5 : f32 to vector<16x512xf32>
    %8 = arith.maximumf %6, %7 : vector<16x512xf32>
    %9 = arith.truncf %8 : vector<16x512xf32> to vector<16x512xbf16>
    %c0_6 = arith.constant 0 : index
    %c0_7 = arith.constant 0 : index
    %10 = vector.load %arg4[%c0_6, %c0_7] : memref<512x256xbf16, #tpu.memory_space<vmem>>, vector<512x256xbf16>
    %cst_8 = arith.constant dense<0.000000e+00> : vector<16x256xf32>
    %11 = tpu.matmul %9, %10, %cst_8 {dimension_numbers = #tpu.dot_dimension_numbers<[1], [0], [0], [1], [0, 0, 1, 1], [], []>} : vector<16x512xbf16>, vector<512x256xbf16>, vector<16x256xf32> -> vector<16x256xf32>
    %c0_9 = arith.constant 0 : index
    %c0_10 = arith.constant 0 : index
    %12 = vector.load %arg5[%c0_9, %c0_10] : memref<1x256xf32, #tpu.memory_space<vmem>>, vector<1x256xf32>
    %13 = vector.broadcast %12 : vector<1x256xf32> to vector<16x256xf32>
    %14 = arith.addf %11, %13 : vector<16x256xf32>
    %cst_11 = arith.constant 0.000000e+00 : f32
    %15 = vector.broadcast %cst_11 : f32 to vector<16x256xf32>
    %16 = arith.maximumf %14, %15 : vector<16x256xf32>
    %17 = arith.truncf %16 : vector<16x256xf32> to vector<16x256xbf16>
    %c0_12 = arith.constant 0 : index
    %c0_13 = arith.constant 0 : index
    %18 = vector.load %arg6[%c0_12, %c0_13] : memref<256x128xbf16, #tpu.memory_space<vmem>>, vector<256x128xbf16>
    %cst_14 = arith.constant dense<0.000000e+00> : vector<16x128xf32>
    %19 = tpu.matmul %17, %18, %cst_14 {dimension_numbers = #tpu.dot_dimension_numbers<[1], [0], [0], [1], [0, 0, 1, 1], [], []>} : vector<16x256xbf16>, vector<256x128xbf16>, vector<16x128xf32> -> vector<16x128xf32>
    %c0_15 = arith.constant 0 : index
    %c0_16 = arith.constant 0 : index
    %20 = vector.load %arg7[%c0_15, %c0_16] : memref<1x128xf32, #tpu.memory_space<vmem>>, vector<1x128xf32>
    %21 = vector.broadcast %20 : vector<1x128xf32> to vector<16x128xf32>
    %22 = arith.addf %19, %21 : vector<16x128xf32>
    %23 = arith.negf %22 : vector<16x128xf32>
    %24 = math.exp %23 : vector<16x128xf32>
    %cst_17 = arith.constant 1.000000e+00 : f32
    %25 = vector.broadcast %cst_17 : f32 to vector<16x128xf32>
    %26 = arith.addf %25, %24 : vector<16x128xf32>
    %27 = arith.divf %25, %26 : vector<16x128xf32>
    %c0_18 = arith.constant 0 : index
    %c0_19 = arith.constant 0 : index
    %28 = vector.load %arg8[%c0_18, %c0_19] : memref<16x128xf32, #tpu.memory_space<vmem>>, vector<16x128xf32>
    tpu.vector_store %arg8[%c0_18, %c0_19], %27 {strides = array<i32>} : memref<16x128xf32, #tpu.memory_space<vmem>>, vector<16x128xf32>,
    return
  }
  func.func @transform_0(%arg0: i32) -> (i32, i32) {
    %c0_i32 = arith.constant 0 : i32
    %c0_i32_0 = arith.constant 0 : i32
    return %arg0, %c0_i32 : i32, i32
  }
  func.func @transform_1(%arg0: i32) -> (i32, i32) {
    %c0_i32 = arith.constant 0 : i32
    %c0_i32_0 = arith.constant 0 : i32
    %c0_i32_1 = arith.constant 0 : i32
    return %c0_i32, %c0_i32_0 : i32, i32
  }
  func.func @transform_2(%arg0: i32) -> (i32, i32) {
    %c0_i32 = arith.constant 0 : i32
    %c0_i32_0 = arith.constant 0 : i32
    %c0_i32_1 = arith.constant 0 : i32
    return %c0_i32, %c0_i32_0 : i32, i32
  }
  func.func @transform_3(%arg0: i32) -> (i32, i32) {
    %c0_i32 = arith.constant 0 : i32
    %c0_i32_0 = arith.constant 0 : i32
    %c0_i32_1 = arith.constant 0 : i32
    return %c0_i32, %c0_i32_0 : i32, i32
  }
  func.func @transform_4(%arg0: i32) -> (i32, i32) {
    %c0_i32 = arith.constant 0 : i32
    %c0_i32_0 = arith.constant 0 : i32
    %c0_i32_1 = arith.constant 0 : i32
    return %c0_i32, %c0_i32_0 : i32, i32
  }
  func.func @transform_5(%arg0: i32) -> (i32, i32) {
    %c0_i32 = arith.constant 0 : i32
    %c0_i32_0 = arith.constant 0 : i32
    %c0_i32_1 = arith.constant 0 : i32
    return %c0_i32, %c0_i32_0 : i32, i32
  }
  func.func @transform_6(%arg0: i32) -> (i32, i32) {
    %c0_i32 = arith.constant 0 : i32
    %c0_i32_0 = arith.constant 0 : i32
    %c0_i32_1 = arith.constant 0 : i32
    return %c0_i32, %c0_i32_0 : i32, i32
  }
  func.func @transform_7(%arg0: i32) -> (i32, i32) {
    %c0_i32 = arith.constant 0 : i32
    %c0_i32_0 = arith.constant 0 : i32
    return %arg0, %c0_i32 : i32, i32
  }
}

</mosaic_0001>

<bundles_post_ra>
// kernel: linear_bud_forward.1
= control target key start
LH: loop header
LB: loop body
LE: loop exit
PB: predicated region body
PF: predicated region fallthrough
CT: control target
= control target key end

     0   :  { %12 = vsyncpa [#allocation3], 0  ;;  %s2069_s24 = smov 0   ;;  %s2415_s0 = inlined_call_operand.vmem [shape: f32[32,256], index: 0, kind: input, shape index: {}]   ;;  %s2416_s1 = inlined_call_operand.vmem [shape: bf16[256,512], index: 1, kind: input, shape index: {}]   ;;  %s2417_s2 = inlined_call_operand.vmem [shape: f32[1,512], index: 2, kind: input, shape index: {}]   ;;  %s2418_s3 = inlined_call_operand.hbm [shape: bf16[512,256], index: 3, kind: input, shape index: {}]   ;;  %s2419_s4 = inlined_call_operand.vmem [shape: f32[1,256], index: 4, kind: input, shape index: {}]   ;;  %s2420_s5 = inlined_call_operand.vmem [shape: bf16[256,128], index: 5, kind: input, shape index: {}]   ;;  %s2421_s6 = inlined_call_operand.vmem [shape: f32[1,128], index: 6, kind: input, shape index: {}]   ;;  %s2422_s7 = inlined_call_operand.vmem [shape: f32[32,128], index: 7, kind: output, shape index: {}]  }
   0x1 LB: > { %s1557_s25 = sadd.s32 4294967295, %s2024_s24   ;;  %p1559_p0 = scmp.ge.s32.totalorder %s2024_s24, 1  ;;  %s2024_s24 = sphi %s2069_s24, %s18_s24  }
   0x2   : > { %p201_p1 = scmp.lt.s32.totalorder %s2024_s24, 3  ;;  %s2026_s26 = smov [#allocation2]  }
   0x3   : > { %s219_s27 = sshll.u32 %s2026_s26, 4  ;;  %p2083_p3 = scmp.eq.s32.totalorder %s1557_s25, 0  ;;  %s220_s27 = int_to_ptr.vmem [resolvable:$true] %s219_s27 }
   0x4   : > { %p2077_p2 = pnand %p1559_p0, %p201_p1  ;;  %s1986_s10 = scalar_lea.hbm %s2418_s3, 8192 }
   0x5   : > { %s2427_s29 = scalar_select %p2083_p3, 1, 0 }
   0x6   : > { %s2426_s28 = scalar_select %p2077_p2, 1, 0 }
   0x7   : > { %p1753_p4 = pneg %p2077_p2  ;;  %p1987_p6 = scmp.ne.s32.totalorder %s2418_s3, %s1986_s10 }
   0x8   : > { %p1993_p10 = scmp.lt.u32.totalorder %s1986_s10, %s2418_s3 }
   0x9   : > { %p2091_p5 = pnand %p2083_p3, %p1753_p4 }
   0xb   : > { %p1988_p7 = pneg %p2091_p5 }
   0xd   : > { %p1989_p8 = pnand %p1988_p7, %p1987_p6 }
   0xf   : > { %p1990_p9 = pneg %p1989_p8 }
  0x11   : > { %p1995_p11 = pnand %p1993_p10, %p1990_p9 }
  0x13   : > { %1998 = shalt.err (!%p1995_p11)
}
  0x14   : > { %s1999_s15 = scalar_lea.vmem %s220_s27, 8192  ;;  %p2007_p1 = scmp.lt.s32.totalorder %s220_s27, %s220_s27 }
  0x15   : > { %p2000_p12 = scmp.ne.s32.totalorder %s220_s27, %s1999_s15  ;;  %p2008_p4 = scmp.lt.s32.totalorder %s1999_s15, %s1999_s15 }
  0x17   : > { %p2002_p13 = pnand %p2000_p12, %p1988_p7  ;;  %p2009_p3 = por %p2008_p4, %p2007_p1 }
  0x19   : > { %p2003_p0 = pneg %p2002_p13 }
  0x1b   : > { %p2010_p2 = pnand %p2009_p3, %p2003_p0 }
  0x1d   : > { %2013 = shalt.err (!%p2010_p2)
}
  0x1e   : > { %s2027_s16 = smov 128   ;;  %s2028_s17 = smov 8  }
  0x1f   : > { %1756 = dma.hbm_to_vmem [thread:$0]  (!%p2091_p5), %s2418_s3, 8192, %s220_s27, [#allocation3], %s2027_s16, %s2027_s16, %s2028_s17  }
  0x20   : > { %p2429_p6 = scmp.ne.s32.totalorder %s2426_s28, 0 }
  0x21   : > { %p2430_p8 = scmp.ne.s32.totalorder (!%p2429_p6), %s2427_s29, 0 }
  0x22   : > { %254 = sbr.rel (%p2429_p6) target bundleno = 861 (0x35d), region = 48 }
  0x29   : > { %2019 = dma.done.wait (%p2430_p8), [#allocation3], 8192  }
  0x2a   : > { %2021 = vsyncadd (%p2430_p8), [#allocation3], 4294959104  ;;  %v1770_v0 = vld [vmem:[%s2416_s1 + $0x4] ss:$16 sps:$4 sm:$0xff]   ;;  %v1772_v1 = vld [vmem:[%s2416_s1] ss:$16 sps:$4 sm:$0xff]  }
  0x2b   : > { %713 = vmatprep.subr.bf16.mxu1 %v1770_v0  ;;  %v1773_v2 = vld [vmem:[%s2416_s1 + $0x24] ss:$16 sps:$4 sm:$0xff]   ;;  %v1775_v3 = vld [vmem:[%s2416_s1 + $0x20] ss:$16 sps:$4 sm:$0xff]   ;;  %s1564_s9 = sshll.u32 %s1557_s25, 1 }
  0x2c   : > { %714 = vmatpush1.bf16.msra.mxu1 %v1772_v1  ;;  %v1776_v4 = vld [vmem:[%s2416_s1 + $0x44] ss:$16 sps:$4 sm:$0xff]   ;;  %v1778_v5 = vld [vmem:[%s2416_s1 + $0x40] ss:$16 sps:$4 sm:$0xff]   ;;  %p288_p2 = scmp.lt.s32.totalorder %s1564_s9, 3 }
  0x2d   : > { %715 = vmatprep.subr.bf16.mxu1 %v1773_v2  ;;  %v1779_v6 = vld [vmem:[%s2416_s1 + $0x64] ss:$16 sps:$4 sm:$0xff]   ;;  %v1781_v7 = vld [vmem:[%s2416_s1 + $0x60] ss:$16 sps:$4 sm:$0xff]   ;;  %v1820_v46 = vld [vmem:[%s2416_s1 + $0xc] ss:$16 sps:$4 sm:$0xff]  }
  0x2e   : > { %s2432_s9 = smov (!%p288_p2, %s1564_s9), 3  ;;  %v1782_v8 = vld [vmem:[%s2416_s1 + $0x84] ss:$16 sps:$4 sm:$0xff]   ;;  %v1784_v9 = vld [vmem:[%s2416_s1 + $0x80] ss:$16 sps:$4 sm:$0xff]  }
  0x2f   : > { %s1718_s19 = sshll.u32 %s2432_s9, 4  ;;  %v1785_v10 = vld [vmem:[%s2416_s1 + $0xa4] ss:$16 sps:$4 sm:$0xff]   ;;  %v1787_v11 = vld [vmem:[%s2416_s1 + $0xa0] ss:$16 sps:$4 sm:$0xff]   ;;  %s1568_s23 = sshll.u32 %s2432_s9, 3 }
  0x30   : > { %716 = vmatpush1.bf16.msra.mxu1 %v1775_v3  ;;  %s2158_s26 = scalar_lea.vmem %s2415_s0, %s1718_s19  ;;  %v1788_v12 = vld [vmem:[%s2416_s1 + $0xc4] ss:$16 sps:$4 sm:$0xff]   ;;  %v1790_v16 = vld [vmem:[%s2416_s1 + $0xc0] ss:$16 sps:$4 sm:$0xff]   ;;  %v1818_v49 = vld [vmem:[%s2416_s1 + $0x8] ss:$16 sps:$4 sm:$0xff]   ;;  %s298_s30 = scalar_lea.vmem %s2422_s7, %s1568_s23 }
  0x31   : > { %717 = vmatprep.subr.bf16.mxu1 %v1776_v4  ;;  %v302_v13 = vld [vmem:[%s2158_s26 + $0x8] sm:$0xff]  ;;  %v304_v14 = vld [vmem:[%s2158_s26 + $0x18] sm:$0xff]  ;;  %v1791_v17 = vld [vmem:[%s2416_s1 + $0xe4] ss:$16 sps:$4 sm:$0xff]  }
  0x32   : > { %v2168_v15 = vpack.c.bf16 %v304_v14, %v302_v13  ;;  %v1793_v18 = vld [vmem:[%s2416_s1 + $0xe0] ss:$16 sps:$4 sm:$0xff]   ;;  %v1794_v19 = vld [vmem:[%s2416_s1 + $0x104] ss:$16 sps:$4 sm:$0xff]   ;;  %v1823_v51 = vld [vmem:[%s2416_s1 + $0x2c] ss:$16 sps:$4 sm:$0xff]  }
  0x33   : > { %v1796_v20 = vld [vmem:[%s2416_s1 + $0x100] ss:$16 sps:$4 sm:$0xff]   ;;  %v1797_v21 = vld [vmem:[%s2416_s1 + $0x124] ss:$16 sps:$4 sm:$0xff]   ;;  %v1821_v54 = vld [vmem:[%s2416_s1 + $0x28] ss:$16 sps:$4 sm:$0xff]  }
  0x34   : > { %718 = vmatpush1.bf16.msra.mxu1 %v1778_v5  ;;  %745 = vmatprep.mubr.bf16.mxu1 %v2168_v15  ;;  %v1799_v22 = vld [vmem:[%s2416_s1 + $0x120] ss:$16 sps:$4 sm:$0xff]   ;;  %v1800_v23 = vld [vmem:[%s2416_s1 + $0x144] ss:$16 sps:$4 sm:$0xff]   ;;  %v1826_v55 = vld [vmem:[%s2416_s1 + $0x4c] ss:$16 sps:$4 sm:$0xff]  }
  0x35   : > { %719 = vmatprep.subr.bf16.mxu1 %v1779_v6  ;;  %v1802_v24 = vld [vmem:[%s2416_s1 + $0x140] ss:$16 sps:$4 sm:$0xff]   ;;  %v1803_v25 = vld [vmem:[%s2416_s1 + $0x164] ss:$16 sps:$4 sm:$0xff]   ;;  %v1824_v58 = vld [vmem:[%s2416_s1 + $0x48] ss:$16 sps:$4 sm:$0xff]  }
  0x36   : > { %v1805_v26 = vld [vmem:[%s2416_s1 + $0x160] ss:$16 sps:$4 sm:$0xff]   ;;  %v1806_v27 = vld [vmem:[%s2416_s1 + $0x184] ss:$16 sps:$4 sm:$0xff]   ;;  %v1829_v59 = vld [vmem:[%s2416_s1 + $0x6c] ss:$16 sps:$4 sm:$0xff]  }
  0x37   : > { %v1866_v28 = vld [vmem:[#allocation2 + $0x4] ss:$8 sps:$4 sm:$0xff]   ;;  %v1868_v29 = vld [vmem:[#allocation2] ss:$8 sps:$4 sm:$0xff]   ;;  %v1869_v31 = vld [vmem:[#allocation2 + $0x14] ss:$8 sps:$4 sm:$0xff]  }
  0x38   : > { %720 = vmatpush1.bf16.msra.mxu1 %v1781_v7  ;;  %v1808_v30 = vld [vmem:[%s2416_s1 + $0x180] ss:$16 sps:$4 sm:$0xff]   ;;  %1207 = vmatprep.subr.bf16.mxu0 %v1866_v28  ;;  %v1809_v32 = vld [vmem:[%s2416_s1 + $0x1a4] ss:$16 sps:$4 sm:$0xff]   ;;  %v1827_v62 = vld [vmem:[%s2416_s1 + $0x68] ss:$16 sps:$4 sm:$0xff]  }
  0x39   : > { %721 = vmatprep.subr.bf16.mxu1 %v1782_v8  ;;  %1208 = vmatpush1.bf16.msra.mxu0 %v1868_v29  ;;  %v1871_v33 = vld [vmem:[#allocation2 + $0x10] ss:$8 sps:$4 sm:$0xff]   ;;  %v1872_v34 = vld [vmem:[#allocation2 + $0x24] ss:$8 sps:$4 sm:$0xff]   ;;  %v1874_v37 = vld [vmem:[#allocation2 + $0x20] ss:$8 sps:$4 sm:$0xff]  }
  0x3a   : > { %1209 = vmatprep.subr.bf16.mxu0 %v1869_v31  ;;  %v1811_v35 = vld [vmem:[%s2416_s1 + $0x1a0] ss:$16 sps:$4 sm:$0xff]   ;;  %v1812_v36 = vld [vmem:[%s2416_s1 + $0x1c4] ss:$16 sps:$4 sm:$0xff]   ;;  %v1832_v63 = vld [vmem:[%s2416_s1 + $0x8c] ss:$16 sps:$4 sm:$0xff]  }
  0x3b   : > { %v1875_v38 = vld [vmem:[#allocation2 + $0x34] ss:$8 sps:$4 sm:$0xff]   ;;  %v1814_v39 = vld [vmem:[%s2416_s1 + $0x1c0] ss:$16 sps:$4 sm:$0xff]   ;;  %v1878_v42 = vld [vmem:[#allocation2 + $0x44] ss:$8 sps:$4 sm:$0xff]  }
  0x3c   : > { %722 = vmatpush1.bf16.msra.mxu1 %v1784_v9  ;;  %v1815_v40 = vld [vmem:[%s2416_s1 + $0x1e4] ss:$16 sps:$4 sm:$0xff]   ;;  %v1877_v41 = vld [vmem:[#allocation2 + $0x30] ss:$8 sps:$4 sm:$0xff]   ;;  %v1880_v47 = vld [vmem:[#allocation2 + $0x40] ss:$8 sps:$4 sm:$0xff]  }
  0x3d   : > { %723 = vmatprep.subr.bf16.mxu1 %v1785_v10  ;;  %1210 = vmatpush1.bf16.msra.mxu0 %v1871_v33  ;;  %v1817_v43 = vld [vmem:[%s2416_s1 + $0x1e0] ss:$16 sps:$4 sm:$0xff]   ;;  %v1881_v48 = vld [vmem:[#allocation2 + $0x54] ss:$8 sps:$4 sm:$0xff]   ;;  %v1884_v53 = vld [vmem:[#allocation2 + $0x64] ss:$8 sps:$4 sm:$0xff]  }
  0x3e   : > { %1211 = vmatprep.subr.bf16.mxu0 %v1872_v34  ;;  %v301_v44 = vld [vmem:[%s2158_s26] sm:$0xff]  ;;  %v303_v45 = vld [vmem:[%s2158_s26 + $0x10] sm:$0xff]  ;;  %v1830_v2 = vld [vmem:[%s2416_s1 + $0x88] ss:$16 sps:$4 sm:$0xff]  }
  0x3f   : > { %v2236_v50 = vpack.c.bf16 %v303_v45, %v301_v44  ;;  %v1883_v52 = vld [vmem:[#allocation2 + $0x50] ss:$8 sps:$4 sm:$0xff]   ;;  %v1886_v56 = vld [vmem:[#allocation2 + $0x60] ss:$8 sps:$4 sm:$0xff]   ;;  %v1887_v57 = vld [vmem:[#allocation2 + $0x74] ss:$8 sps:$4 sm:$0xff]  }
  0x40   : > { %724 = vmatpush1.bf16.msra.mxu1 %v1787_v11  ;;  %v1889_v60 = vld [vmem:[#allocation2 + $0x70] ss:$8 sps:$4 sm:$0xff]   ;;  %v1890_v61 = vld [vmem:[#allocation2 + $0x84] ss:$8 sps:$4 sm:$0xff]   ;;  %v1892_v0 = vld [vmem:[#allocation2 + $0x80] ss:$8 sps:$4 sm:$0xff]  }
  0x41   : > { %725 = vmatprep.subr.bf16.mxu1 %v1788_v12  ;;  %1212 = vmatpush1.bf16.msra.mxu0 %v1874_v37  ;;  %v1893_v1 = vld [vmem:[#allocation2 + $0x94] ss:$8 sps:$4 sm:$0xff]   ;;  %v1895_v4 = vld [vmem:[#allocation2 + $0x90] ss:$8 sps:$4 sm:$0xff]   ;;  %v1896_v5 = vld [vmem:[#allocation2 + $0xa4] ss:$8 sps:$4 sm:$0xff]  }
  0x42   : > { %1213 = vmatprep.subr.bf16.mxu0 %v1875_v38  ;;  %v1835_v3 = vld [vmem:[%s2416_s1 + $0xac] ss:$16 sps:$4 sm:$0xff]   ;;  %v1833_v6 = vld [vmem:[%s2416_s1 + $0xa8] ss:$16 sps:$4 sm:$0xff]   ;;  %v1967_v44 = vld [vmem:[%s2420_s5 + $0x10] sm:$0xff]  }
  0x43   : > { %v1838_v7 = vld [vmem:[%s2416_s1 + $0xcc] ss:$16 sps:$4 sm:$0xff]   ;;  %v1898_v8 = vld [vmem:[#allocation2 + $0xa0] ss:$8 sps:$4 sm:$0xff]   ;;  %v1901_v12 = vld [vmem:[#allocation2 + $0xb0] ss:$8 sps:$4 sm:$0xff]  }
  0x44   : > { %726 = vmatpush1.bf16.msra.mxu1 %v1790_v16  ;;  %v1899_v9 = vld [vmem:[#allocation2 + $0xb4] ss:$8 sps:$4 sm:$0xff]   ;;  %v1836_v10 = vld [vmem:[%s2416_s1 + $0xc8] ss:$16 sps:$4 sm:$0xff]   ;;  %v1902_v13 = vld [vmem:[#allocation2 + $0xc4] ss:$8 sps:$4 sm:$0xff]  }
  0x45   : > { %727 = vmatprep.subr.bf16.mxu1 %v1791_v17  ;;  %1214 = vmatpush1.bf16.msra.mxu0 %v1877_v41  ;;  %v1841_v11 = vld [vmem:[%s2416_s1 + $0xec] ss:$16 sps:$4 sm:$0xff]   ;;  %v1839_v14 = vld [vmem:[%s2416_s1 + $0xe8] ss:$16 sps:$4 sm:$0xff]  }
  0x46   : > { %1215 = vmatprep.subr.bf16.mxu0 %v1878_v42  ;;  %v1904_v16 = vld [vmem:[#allocation2 + $0xc0] ss:$8 sps:$4 sm:$0xff]   ;;  %v1905_v17 = vld [vmem:[#allocation2 + $0xd4] ss:$8 sps:$4 sm:$0xff]   ;;  %v1907_v33 = vld [vmem:[#allocation2 + $0xd0] ss:$8 sps:$4 sm:$0xff]  }
  0x47   : > { %v1857_v28 = vld [vmem:[%s2416_s1 + $0x1a8] ss:$16 sps:$4 sm:$0xff]   ;;  %v1862_v29 = vld [vmem:[%s2416_s1 + $0x1cc] ss:$16 sps:$4 sm:$0xff]  }
  0x48   : > { %728 = vmatpush1.bf16.msra.mxu1 %v1793_v18  ;;  %v1842_v18 = vld [vmem:[%s2416_s1 + $0x108] ss:$16 sps:$4 sm:$0xff]   ;;  %v1865_v31 = vld [vmem:[%s2416_s1 + $0x1ec] ss:$16 sps:$4 sm:$0xff]  }
  0x49   : > { %729 = vmatprep.subr.bf16.mxu1 %v1794_v19  ;;  %1216 = vmatpush1.bf16.msra.mxu0 %v1880_v47  ;;  %v1847_v19 = vld [vmem:[%s2416_s1 + $0x12c] ss:$16 sps:$4 sm:$0xff]   ;;  %v1913_v37 = vld [vmem:[#allocation2 + $0xf0] ss:$8 sps:$4 sm:$0xff]   ;;  %v1970_v47 = vld [vmem:[%s2420_s5 + $0x60] sm:$0xff]  }
  0x4a   : > { %1217 = vmatprep.subr.bf16.mxu0 %v1881_v48  ;;  %v1908_v34 = vld [vmem:[#allocation2 + $0xe4] ss:$8 sps:$4 sm:$0xff]   ;;  %v1968_v45 = vld [vmem:[%s2420_s5 + $0x58] sm:$0xff]  }
  0x4b   : > { %v1916_v38 = vld [vmem:[#allocation2 + $0x104] ss:$8 sps:$4 sm:$0xff]  }
  0x4c   : > { %730 = vmatpush1.bf16.msra.mxu1 %v1796_v20  ;;  %v1845_v20 = vld [vmem:[%s2416_s1 + $0x128] ss:$16 sps:$4 sm:$0xff]   ;;  %v1971_v48 = vld [vmem:[%s2420_s5 + $0x20] sm:$0xff]  }
  0x4d   : > { %731 = vmatprep.subr.bf16.mxu1 %v1797_v21  ;;  %1218 = vmatpush1.bf16.msra.mxu0 %v1883_v52  ;;  %v1850_v21 = vld [vmem:[%s2416_s1 + $0x14c] ss:$16 sps:$4 sm:$0xff]  }
  0x4e   : > { %1219 = vmatprep.subr.bf16.mxu0 %v1884_v53  ;;  %v1964_v41 = vld [vmem:[%s2420_s5 + $0x48] sm:$0xff]   ;;  %v2370_v53 = vld [vmem:[%s2417_s2] sm:$0xf] }
  0x4f   : > { %v1965_v42 = vld [vmem:[%s2420_s5 + $0x8] sm:$0xff]  }
  0x50   : > { %732 = vmatpush1.bf16.msra.mxu1 %v1799_v22  ;;  %v1848_v22 = vld [vmem:[%s2416_s1 + $0x148] ss:$16 sps:$4 sm:$0xff]  }
  0x51   : > { %733 = vmatprep.subr.bf16.mxu1 %v1800_v23  ;;  %1220 = vmatpush1.bf16.msra.mxu0 %v1886_v56  ;;  %v1853_v23 = vld [vmem:[%s2416_s1 + $0x16c] ss:$16 sps:$4 sm:$0xff]  }
  0x52   : > { %1221 = vmatprep.subr.bf16.mxu0 %v1887_v57 }
  0x54   : > { %734 = vmatpush1.bf16.msra.mxu1 %v1802_v24  ;;  %v1851_v24 = vld [vmem:[%s2416_s1 + $0x168] ss:$16 sps:$4 sm:$0xff]  }
  0x55   : > { %735 = vmatprep.subr.bf16.mxu1 %v1803_v25  ;;  %1222 = vmatpush1.bf16.msra.mxu0 %v1889_v60  ;;  %v1856_v25 = vld [vmem:[%s2416_s1 + $0x18c] ss:$16 sps:$4 sm:$0xff]  }
  0x56   : > { %1223 = vmatprep.subr.bf16.mxu0 %v1890_v61 }
  0x58   : > { %736 = vmatpush1.bf16.msra.mxu1 %v1805_v26  ;;  %v1854_v26 = vld [vmem:[%s2416_s1 + $0x188] ss:$16 sps:$4 sm:$0xff]  }
  0x59   : > { %737 = vmatprep.subr.bf16.mxu1 %v1806_v27  ;;  %1224 = vmatpush1.bf16.msra.mxu0 %v1892_v0  ;;  %v1859_v27 = vld [vmem:[%s2416_s1 + $0x1ac] ss:$16 sps:$4 sm:$0xff]  }
  0x5a   : > { %1225 = vmatprep.subr.bf16.mxu0 %v1893_v1 }
  0x5c   : > { %738 = vmatpush1.bf16.msra.mxu1 %v1808_v30  ;;  %v1860_v30 = vld [vmem:[%s2416_s1 + $0x1c8] ss:$16 sps:$4 sm:$0xff]  }
  0x5d   : > { %739 = vmatprep.subr.bf16.mxu1 %v1809_v32  ;;  %1226 = vmatpush1.bf16.msra.mxu0 %v1895_v4  ;;  %v1863_v32 = vld [vmem:[%s2416_s1 + $0x1e8] ss:$16 sps:$4 sm:$0xff]  }
  0x5e   : > { %1227 = vmatprep.subr.bf16.mxu0 %v1896_v5 }
  0x60   : > { %740 = vmatpush1.bf16.msra.mxu1 %v1811_v35  ;;  %v1910_v35 = vld [vmem:[#allocation2 + $0xe0] ss:$8 sps:$4 sm:$0xff]  }
  0x61   : > { %741 = vmatprep.subr.bf16.mxu1 %v1812_v36  ;;  %1228 = vmatpush1.bf16.msra.mxu0 %v1898_v8  ;;  %v1911_v36 = vld [vmem:[#allocation2 + $0xf4] ss:$8 sps:$4 sm:$0xff]  }
  0x62   : > { %1229 = vmatprep.subr.bf16.mxu0 %v1899_v9  ;;  %v1919_v8 = vld [vmem:[#allocation2 + $0x114] ss:$8 sps:$4 sm:$0xff]   ;;  %v1917_v9 = vld [vmem:[#allocation2 + $0x110] ss:$8 sps:$4 sm:$0xff]  }
  0x64   : > { %742 = vmatpush1.bf16.msra.mxu1 %v1814_v39  ;;  %v1962_v39 = vld [vmem:[%s2420_s5 + $0x40] sm:$0xff]  }
  0x65   : > { %743 = vmatprep.subr.bf16.mxu1 %v1815_v40  ;;  %1230 = vmatpush1.bf16.msra.mxu0 %v1901_v12  ;;  %v1963_v40 = vld [vmem:[%s2420_s5] sm:$0xff]   ;;  %v1925_v12 = vld [vmem:[#allocation2 + $0x134] ss:$8 sps:$4 sm:$0xff]  }
  0x66   : > { %1231 = vmatprep.subr.bf16.mxu0 %v1902_v13  ;;  %v1923_v13 = vld [vmem:[#allocation2 + $0x130] ss:$8 sps:$4 sm:$0xff]  }
  0x68   : > { %744 = vmatpush1.bf16.msra.mxu1 %v1817_v43  ;;  %v1966_v43 = vld [vmem:[%s2420_s5 + $0x50] sm:$0xff]  }
  0x69   : > { %756 = vmatprep.subr.bf16.mxu1 %v1820_v46  ;;  %1232 = vmatpush1.bf16.msra.mxu0 %v1904_v16  ;;  %v1969_v46 = vld [vmem:[%s2420_s5 + $0x18] sm:$0xff]  }
  0x6a   : > { %1233 = vmatprep.subr.bf16.mxu0 %v1905_v17  ;;  %v1931_v16 = vld [vmem:[#allocation2 + $0x154] ss:$8 sps:$4 sm:$0xff]   ;;  %v1929_v17 = vld [vmem:[#allocation2 + $0x150] ss:$8 sps:$4 sm:$0xff]  }
  0x6b   : > { %746 = vmatmul.mubr.bf16.vlgmr.msra.gmra.mrb[0].mxu1 %v2236_v50 }
  0x6c   : > { %757 = vmatpush1.bf16.msra.mxu1 %v1818_v49  ;;  %788 = vmatprep.mubr.bf16.mxu1 %v2168_v15  ;;  %v1844_v15 = vld [vmem:[%s2416_s1 + $0x10c] ss:$16 sps:$4 sm:$0xff]  }
  0x6d   : > { %758 = vmatprep.subr.bf16.mxu1 %v1823_v51  ;;  %1234 = vmatpush1.bf16.msra.mxu0 %v1907_v33  ;;  %v1972_v49 = vld [vmem:[%s2420_s5 + $0x68] sm:$0xff]  }
  0x6e   : > { %1235 = vmatprep.subr.bf16.mxu0 %v1908_v34 }
  0x70   : > { %759 = vmatpush1.bf16.msra.mxu1 %v1821_v54 }
  0x71   : > { %760 = vmatprep.subr.bf16.mxu1 %v1826_v55  ;;  %1236 = vmatpush1.bf16.msra.mxu0 %v1910_v35  ;;  %v1953_v35 = vld [vmem:[#allocation2 + $0x1d0] ss:$8 sps:$4 sm:$0xff]  }
  0x72   : > { %1237 = vmatprep.subr.bf16.mxu0 %v1911_v36 }
  0x74   : > { %761 = vmatpush1.bf16.msra.mxu1 %v1824_v58 }
  0x75   : > { %762 = vmatprep.subr.bf16.mxu1 %v1829_v59  ;;  %1238 = vmatpush1.bf16.msra.mxu0 %v1913_v37  ;;  %v1958_v37 = vld [vmem:[#allocation2 + $0x1e4] ss:$8 sps:$4 sm:$0xff]  }
  0x76   : > { %1250 = vmatprep.subr.bf16.mxu0 %v1916_v38 }
  0x78   : > { %763 = vmatpush1.bf16.msra.mxu1 %v1827_v62 }
  0x79   : > { %764 = vmatprep.subr.bf16.mxu1 %v1832_v63 }
  0x7c   : > { %765 = vmatpush1.bf16.msra.mxu1 %v1830_v2 }
  0x7d   : > { %766 = vmatprep.subr.bf16.mxu1 %v1835_v3 }
  0x80   : > { %767 = vmatpush1.bf16.msra.mxu1 %v1833_v6 }
  0x81   : > { %768 = vmatprep.subr.bf16.mxu1 %v1838_v7  ;;  %v1914_v7 = vld [vmem:[#allocation2 + $0x100] ss:$8 sps:$4 sm:$0xff]  }
  0x84   : > { %769 = vmatpush1.bf16.msra.mxu1 %v1836_v10  ;;  %v1922_v10 = vld [vmem:[#allocation2 + $0x124] ss:$8 sps:$4 sm:$0xff]  }
  0x85   : > { %770 = vmatprep.subr.bf16.mxu1 %v1841_v11  ;;  %v1920_v11 = vld [vmem:[#allocation2 + $0x120] ss:$8 sps:$4 sm:$0xff]  }
  0x88   : > { %771 = vmatpush1.bf16.msra.mxu1 %v1839_v14  ;;  %v1928_v14 = vld [vmem:[#allocation2 + $0x144] ss:$8 sps:$4 sm:$0xff]  }
  0x89   : > { %772 = vmatprep.subr.bf16.mxu1 %v1844_v15  ;;  %v1926_v15 = vld [vmem:[#allocation2 + $0x140] ss:$8 sps:$4 sm:$0xff]  }
  0x8c   : > { %773 = vmatpush1.bf16.msra.mxu1 %v1842_v18  ;;  %v1934_v18 = vld [vmem:[#allocation2 + $0x164] ss:$8 sps:$4 sm:$0xff]  }
  0x8d   : > { %774 = vmatprep.subr.bf16.mxu1 %v1847_v19  ;;  %v1932_v19 = vld [vmem:[#allocation2 + $0x160] ss:$8 sps:$4 sm:$0xff]  }
  0x90   : > { %775 = vmatpush1.bf16.msra.mxu1 %v1845_v20  ;;  %v1937_v20 = vld [vmem:[#allocation2 + $0x174] ss:$8 sps:$4 sm:$0xff]  }
  0x91   : > { %776 = vmatprep.subr.bf16.mxu1 %v1850_v21  ;;  %v1935_v21 = vld [vmem:[#allocation2 + $0x170] ss:$8 sps:$4 sm:$0xff]  }
  0x94   : > { %777 = vmatpush1.bf16.msra.mxu1 %v1848_v22  ;;  %v1940_v22 = vld [vmem:[#allocation2 + $0x184] ss:$8 sps:$4 sm:$0xff]  }
  0x95   : > { %778 = vmatprep.subr.bf16.mxu1 %v1853_v23  ;;  %v1938_v23 = vld [vmem:[#allocation2 + $0x180] ss:$8 sps:$4 sm:$0xff]  }
  0x98   : > { %779 = vmatpush1.bf16.msra.mxu1 %v1851_v24  ;;  %v1943_v24 = vld [vmem:[#allocation2 + $0x194] ss:$8 sps:$4 sm:$0xff]  }
  0x99   : > { %780 = vmatprep.subr.bf16.mxu1 %v1856_v25  ;;  %v1941_v25 = vld [vmem:[#allocation2 + $0x190] ss:$8 sps:$4 sm:$0xff]  }
  0x9c   : > { %781 = vmatpush1.bf16.msra.mxu1 %v1854_v26  ;;  %v1946_v26 = vld [vmem:[#allocation2 + $0x1a4] ss:$8 sps:$4 sm:$0xff]  }
  0x9d   : > { %782 = vmatprep.subr.bf16.mxu1 %v1859_v27  ;;  %v1944_v27 = vld [vmem:[#allocation2 + $0x1a0] ss:$8 sps:$4 sm:$0xff]  }
  0xa0   : > { %783 = vmatpush1.bf16.msra.mxu1 %v1857_v28  ;;  %v1949_v28 = vld [vmem:[#allocation2 + $0x1b4] ss:$8 sps:$4 sm:$0xff]  }
  0xa1   : > { %784 = vmatprep.subr.bf16.mxu1 %v1862_v29  ;;  %v1947_v29 = vld [vmem:[#allocation2 + $0x1b0] ss:$8 sps:$4 sm:$0xff]  }
  0xa4   : > { %785 = vmatpush1.bf16.msra.mxu1 %v1860_v30  ;;  %v1952_v30 = vld [vmem:[#allocation2 + $0x1c4] ss:$8 sps:$4 sm:$0xff]  }
  0xa5   : > { %786 = vmatprep.subr.bf16.mxu1 %v1865_v31  ;;  %v1950_v31 = vld [vmem:[#allocation2 + $0x1c0] ss:$8 sps:$4 sm:$0xff]  }
  0xa8   : > { %787 = vmatpush1.bf16.msra.mxu1 %v1863_v32  ;;  %v1955_v32 = vld [vmem:[#allocation2 + $0x1d4] ss:$8 sps:$4 sm:$0xff]  }
  0xa9   : > { %1719 = vmatprep.subr.bf16.mxu1 %v1962_v39 }
  0xab   : > { %789 = vmatmul.mubr.bf16.vlgmr.msra.gmra.mrb[4].mxu1 %v2236_v50  ;;  %v373_v50 = vlaneseq }
  0xac   : > { %1720 = vmatpush3.bf16.msra.mxu1 %v1963_v40  ;;  %v1956_v40 = vld [vmem:[#allocation2 + $0x1e0] ss:$8 sps:$4 sm:$0xff]  }
  0xad   : > { %1721 = vmatprep.subr.bf16.mxu1 %v1964_v41  ;;  %v2364_v51 = vshrl.u32 %v373_v50, 7 }
  0xaf   : > { %v375_v52 = vsub.s32 0, %v2364_v51  ;;  %v379_v54 = vsub.s32 1, %v2364_v51  ;;  %v383_v33 = vsub.s32 2, %v2364_v51  ;;  %v387_v34 = vsub.s32 3, %v2364_v51  ;;  %v1697_v51 = vld [vmem:[%s2421_s6] ss:$0 sm:$0xff] }
  0xb0   : > { %1722 = vmatpush3.bf16.msra.mxu1 %v1965_v42 }
  0xb1   : > { %1723 = vmatprep.subr.bf16.mxu1 %v1966_v43  ;;  %v376_v55 = vrot.slane %v2370_v53, %v375_v52  ;;  %v380_v56 = vrot.slane %v2370_v53, %v379_v54  ;;  %v384_v36 = vrot.slane %v2370_v53, %v383_v33  ;;  %v388_v38 = vrot.slane %v2370_v53, %v387_v34  ;;  %v1961_v43 = vld [vmem:[#allocation2 + $0x1f4] ss:$8 sps:$4 sm:$0xff]  }
  0xb4   : > { %1724 = vmatpush3.bf16.msra.mxu1 %v1967_v44 }
  0xb5   : > { %1725 = vmatprep.subr.bf16.mxu1 %v1968_v45 }
  0xb8   : > { %1726 = vmatpush3.bf16.msra.mxu1 %v1969_v46 }
  0xb9   : > { %1727 = vmatprep.subr.bf16.mxu1 %v1970_v47 }
  0xbc   : > { %1728 = vmatpush3.bf16.msra.mxu1 %v1971_v48 }
  0xbd   : > { %1729 = vmatprep.subr.bf16.mxu1 %v1972_v49  ;;  %v1959_v49 = vld [vmem:[#allocation2 + $0x1f0] ss:$8 sps:$4 sm:$0xff]  }
 0x13e   : > { %v747_v57 = vpop.f32.mrb[0].mxu1 }
 0x13f   : > { %v748_v58 = vadd.f32 %v747_v57, %v376_v55  ;;  %v749_v59 = vpop.f32.mrb[1].mxu1 }
 0x140   : > { %v750_v60 = vadd.f32 %v749_v59, %v380_v56  ;;  %v751_v61 = vpop.f32.mrb[2].mxu1  ;;  %v1973_v59 = vld [vmem:[%s2420_s5 + $0x28] sm:$0xff]  }
 0x141   : > { %v799_v62 = vmax.f32 %v748_v58, 0.0  ;;  %v752_v63 = vadd.f32 %v751_v61, %v376_v55  ;;  %v753_v0 = vpop.f32.mrb[3].mxu1  ;;  %1730 = vmatpush3.bf16.msra.mxu1 %v1973_v59  ;;  %v1975_v61 = vld [vmem:[%s2420_s5 + $0x30] sm:$0xff]  }
 0x142   : > { %v754_v1 = vadd.f32 %v753_v0, %v380_v56  ;;  %v800_v3 = vmax.f32 %v750_v60, 0.0  ;;  %v1974_v60 = vld [vmem:[%s2420_s5 + $0x70] sm:$0xff]   ;;  %v875_v0 = vld [vmem:[%s2419_s4] sm:$0x3] }
 0x143   : > { %v803_v2 = vmax.f32 %v752_v63, 0.0  ;;  %1731 = vmatprep.subr.bf16.mxu1 %v1974_v60  ;;  %v1977_v63 = vld [vmem:[%s2420_s5 + $0x38] sm:$0xff]  }
 0x144   : > { %v804_v4 = vmax.f32 %v754_v1, 0.0  ;;  %v880_v1 = vrot.slane %v875_v0, %v375_v52 }
 0x145   : > { %v807_v5 = vpack.c.bf16 %v803_v2, %v799_v62  ;;  %1732 = vmatpush3.bf16.msra.mxu1 %v1975_v61  ;;  %v1976_v62 = vld [vmem:[%s2420_s5 + $0x78] sm:$0xff]   ;;  %v884_v2 = vrot.slane %v875_v0, %v379_v54 }
 0x146   : > { %v808_v6 = vpack.c.bf16 %v804_v4, %v800_v3  ;;  %1733 = vmatprep.subr.bf16.mxu1 %v1976_v62 }
 0x148   : > { %1239 = vmatprep.mubr.bf16.mxu0 %v808_v6 }
 0x149   : > { %1240 = vmatmul.mubr.bf16.vlgmr.msra.gmra.mrb[0].mxu0 %v807_v5  ;;  %1734 = vmatpush3.bf16.msra.mxu1 %v1977_v63 }
 0x14a   : > { %1251 = vmatpush1.bf16.msra.mxu0 %v1914_v7 }
 0x14b   : > { %1252 = vmatprep.subr.bf16.mxu0 %v1919_v8 }
 0x14e   : > { %1253 = vmatpush1.bf16.msra.mxu0 %v1917_v9 }
 0x14f   : > { %1254 = vmatprep.subr.bf16.mxu0 %v1922_v10 }
 0x152   : > { %1255 = vmatpush1.bf16.msra.mxu0 %v1920_v11 }
 0x153   : > { %1256 = vmatprep.subr.bf16.mxu0 %v1925_v12 }
 0x156   : > { %1257 = vmatpush1.bf16.msra.mxu0 %v1923_v13 }
 0x157   : > { %1258 = vmatprep.subr.bf16.mxu0 %v1928_v14 }
 0x15a   : > { %1259 = vmatpush1.bf16.msra.mxu0 %v1926_v15 }
 0x15b   : > { %1260 = vmatprep.subr.bf16.mxu0 %v1931_v16 }
 0x15e   : > { %1261 = vmatpush1.bf16.msra.mxu0 %v1929_v17 }
 0x15f   : > { %1262 = vmatprep.subr.bf16.mxu0 %v1934_v18 }
 0x162   : > { %1263 = vmatpush1.bf16.msra.mxu0 %v1932_v19 }
 0x163   : > { %1264 = vmatprep.subr.bf16.mxu0 %v1937_v20 }
 0x166   : > { %1265 = vmatpush1.bf16.msra.mxu0 %v1935_v21 }
 0x167   : > { %1266 = vmatprep.subr.bf16.mxu0 %v1940_v22 }
 0x16a   : > { %1267 = vmatpush1.bf16.msra.mxu0 %v1938_v23 }
 0x16b   : > { %1268 = vmatprep.subr.bf16.mxu0 %v1943_v24 }
 0x16e   : > { %1269 = vmatpush1.bf16.msra.mxu0 %v1941_v25 }
 0x16f   : > { %1270 = vmatprep.subr.bf16.mxu0 %v1946_v26 }
 0x172   : > { %1271 = vmatpush1.bf16.msra.mxu0 %v1944_v27 }
 0x173   : > { %1272 = vmatprep.subr.bf16.mxu0 %v1949_v28 }
 0x176   : > { %1273 = vmatpush1.bf16.msra.mxu0 %v1947_v29 }
 0x177   : > { %1274 = vmatprep.subr.bf16.mxu0 %v1952_v30 }
 0x17a   : > { %1275 = vmatpush1.bf16.msra.mxu0 %v1950_v31 }
 0x17b   : > { %1276 = vmatprep.subr.bf16.mxu0 %v1955_v32 }
 0x17e   : > { %v790_v39 = vpop.f32.mrb[4].mxu1  ;;  %1277 = vmatpush1.bf16.msra.mxu0 %v1953_v35 }
 0x17f   : > { %v791_v41 = vadd.f32 %v790_v39, %v384_v36  ;;  %v792_v42 = vpop.f32.mrb[5].mxu1  ;;  %1278 = vmatprep.subr.bf16.mxu0 %v1958_v37 }
 0x180   : > { %v793_v44 = vadd.f32 %v792_v42, %v388_v38  ;;  %v794_v45 = vpop.f32.mrb[6].mxu1 }
 0x181   : > { %v795_v46 = vadd.f32 %v794_v45, %v384_v36  ;;  %v796_v47 = vpop.f32.mrb[7].mxu1  ;;  %v801_v50 = vmax.f32 %v791_v41, 0.0 }
 0x182   : > { %v797_v48 = vadd.f32 %v796_v47, %v388_v38  ;;  %1279 = vmatpush1.bf16.msra.mxu0 %v1956_v40  ;;  %v802_v56 = vmax.f32 %v793_v44, 0.0 }
 0x183   : > { %v805_v55 = vmax.f32 %v795_v46, 0.0  ;;  %1280 = vmatprep.subr.bf16.mxu0 %v1961_v43 }
 0x184   : > { %v806_v57 = vmax.f32 %v797_v48, 0.0 }
 0x185   : > { %v809_v53 = vpack.c.bf16 %v805_v55, %v801_v50 }
 0x186   : > { %v810_v58 = vpack.c.bf16 %v806_v57, %v802_v56  ;;  %1281 = vmatpush1.bf16.msra.mxu0 %v1959_v49 }
 0x188   : > { %1282 = vmatprep.mubr.bf16.mxu0 %v810_v58 }
 0x189   : > { %1283 = vmatmul.mubr.bf16.vlgmr.msra.gmra.mrb[0].mxu0 %v809_v53 }
 0x25c   : > { %v1284_v3 = vpop.f32.mrb[0].mxu0 }
 0x25d   : > { %v1741_v4 = vadd.f32 %v1284_v3, %v880_v1  ;;  %v1286_v5 = vpop.f32.mrb[1].mxu0 }
 0x25e   : > { %v1742_v6 = vadd.f32 %v1286_v5, %v884_v2  ;;  %v1288_v7 = vpop.f32.mrb[2].mxu0 }
 0x25f   : > { %v1743_v8 = vadd.f32 %v1288_v7, %v880_v1  ;;  %v1290_v9 = vpop.f32.mrb[3].mxu0  ;;  %v1293_v11 = vmax.f32 %v1741_v4, 0.0 }
 0x260   : > { %v1744_v10 = vadd.f32 %v1290_v9, %v884_v2  ;;  %v1294_v13 = vmax.f32 %v1742_v6, 0.0 }
 0x261   : > { %v1295_v12 = vmax.f32 %v1743_v8, 0.0 }
 0x262   : > { %v1296_v14 = vmax.f32 %v1744_v10, 0.0 }
 0x263   : > { %v1297_v15 = vpack.c.bf16 %v1295_v12, %v1293_v11 }
 0x264   : > { %v1298_v16 = vpack.c.bf16 %v1296_v14, %v1294_v13 }
 0x266   : > { %1466 = vmatprep.mubr.bf16.mxu1 %v1298_v16 }
 0x267   : > { %1467 = vmatmul.mubr.bf16.vlgmr.msra.gmra.mrb[8].mxu1 %v1297_v15 }
 0x33a   : > { %v1735_v52 = vpop.f32.mrb[8].mxu1 }
 0x33b   : > { %v1736_v54 = vpop.f32.mrb[9].mxu1 }
 0x33c   : > { %v1737_v17 = vadd.f32 %v1736_v54, %v1735_v52  ;;  %v1738_v18 = vpop.f32.mrb[10].mxu1 }
 0x33d   : > { %v1739_v19 = vpop.f32.mrb[11].mxu1 }
 0x33e   : > { %v1469_v20 = vadd.f32 %v1737_v17, %v1697_v51  ;;  %v1740_v21 = vadd.f32 %v1739_v19, %v1738_v18 }
 0x340   : > { %v1714_v22 = vmul.f32 -1.442695, %v1469_v20  ;;  %v1472_v23 = vadd.f32 %v1740_v21, %v1697_v51 }
 0x342   : > { %1978 = vpow2.f32 %v1714_v22  ;;  %v1715_v24 = vmul.f32 -1.442695, %v1472_v23 }
 0x344   : > { %1980 = vpow2.f32 %v1715_v24 }
 0x34c   : > { %v1979_v25 = vpop.eup %1978 }
 0x34d   : > { %v1481_v26 = vadd.f32 1.0, %v1979_v25 }
 0x34e   : > { %v1981_v27 = vpop.eup %1980 }
 0x34f   : > { %1982 = vrcp.f32 %v1481_v26  ;;  %v1482_v28 = vadd.f32 1.0, %v1981_v27 }
 0x351   : > { %1984 = vrcp.f32 %v1482_v28 }
 0x359   : > { %v1983_v29 = vpop.eup %1982 }
 0x35a   : > { %1487 = vst [vmem:[%s298_s30] sm:$0xff] %v1983_v29 }
 0x35b   : > { %v1985_v30 = vpop.eup %1984 }
 0x35c   : > { %1488 = vst [vmem:[%s298_s30 + $0x8] sm:$0xff] %v1985_v30 }
 0x35d PF: > { %s18_s24 = sadd.s32 1, %s2024_s24  }
 0x35e   : > { %p15_p3 = scmp.ge.s32.totalorder %s18_s24, 4  }
 0x360   :  { %17 = sbr.rel (!%p15_p3) target bundleno = 1 (0x1), region = 83 }
 0x367   :  { %1511 = vsyncpa [#allocation3], 1 }
 0x368   :  { %1513 = vsyncpa [#allocation3 + $0x1], 1 }

</bundles_post_ra>
